<compile_context>
chip_gen: v7x
topology: tpu7x:2x2x1
jax: 0.10.0
libtpu: 0.0.40
codegen_flags: <defaults>
</compile_context>

<pallas_src>
import numpy as np
import jax
import jax.numpy as jnp
from jax import lax
from jax.experimental import pallas as pl
from jax.experimental.pallas import tpu as pltpu

KH = KW = 3   # conv kernel
POOL = 3      # avg-pool kernel & stride
EPS = 1e-5    # BatchNorm eps


def _model_kernel(patches_ref, w_ref, b_ref, g_ref, beta_ref, p_ref, o_ref):
    """Single-invocation kernel.

    patches_ref : (Cin*KH*KW, N*Hout*Wout)   im2col patches, lane axis dense
    w_ref       : (Cout, Cin*KH*KW)          conv weight, flattened (ci, kh, kw)
    b_ref       : (Cout, 1)                  conv bias
    g_ref       : (Cout, 1)                  BN gamma
    beta_ref    : (Cout, 1)                  BN beta
    p_ref       : (N*Hout*Wout, N*Hp*Wp)     fused avg-pool matrix (block-diag)
    o_ref       : (Cout, N*Hp*Wp)            normalized output slab
    """
    # ---- Conv2d as one MXU matmul (im2col) + bias -------------------------
    conv = jnp.dot(w_ref[...], patches_ref[...],
                   preferred_element_type=jnp.float32)           # (Cout, N*Ho*Wo)
    conv = conv + b_ref[...]                                     # broadcast (Cout,1)

    # ---- AvgPool2d(3) as one fused matmul against the pooling matrix ------
    pooled = jnp.dot(conv, p_ref[...],
                     preferred_element_type=jnp.float32)         # (Cout, N*Hp*Wp)

    # ---- BatchNorm2d (training mode), vectorized across channels ----------
    # Per-channel stats = per-row reductions over the lane axis; the data
    # stays in registers (no store->reload), and o_ref is written exactly once.
    cnt = float(pooled.shape[-1])                                # N*Hp*Wp
    mu = jnp.sum(pooled, axis=-1, keepdims=True) / cnt           # (Cout, 1)
    d = pooled - mu
    var = jnp.sum(d * d, axis=-1, keepdims=True) / cnt           # biased variance
    o_ref[...] = d * lax.rsqrt(var + EPS) * g_ref[...] + beta_ref[...]


def model_forward(x, w, b, gamma, beta):
    N, Cin, H, W = x.shape
    Cout = w.shape[0]
    Hout, Wout = H - KH + 1, W - KW + 1
    Hp, Wp = Hout // POOL, Wout // POOL

    x = x.astype(jnp.float32)

    # ---- im2col (wrapper-side layout plumbing) ----------------------------
    # patches[(ci, kh, kw), (n, ho, wo)] = x[n, ci, ho+kh, wo+kw]
    cols = []
    for kh in range(KH):
        for kw in range(KW):
            cols.append(x[:, :, kh:kh + Hout, kw:kw + Wout])     # (N,Cin,Ho,Wo)
    patches = jnp.stack(cols, axis=0)                            # (KH*KW,N,Cin,Ho,Wo)
    patches = patches.reshape(KH, KW, N, Cin, Hout, Wout)
    patches = patches.transpose(3, 0, 1, 2, 4, 5)                # (Cin,KH,KW,N,Ho,Wo)
    patches = patches.reshape(Cin * KH * KW, N * Hout * Wout)

    # Conv weight flattened to match the (ci, kh, kw) row order of `patches`.
    w_mat = w.astype(jnp.float32).reshape(Cout, Cin * KH * KW)

    # ---- fused pooling matrix (host-side constant) ------------------------
    ph = np.zeros((Hout, Hp), np.float32)
    for p in range(Hp):
        ph[POOL * p:POOL * p + POOL, p] = 1.0 / POOL
    pw = np.zeros((Wout, Wp), np.float32)
    for q in range(Wp):
        pw[POOL * q:POOL * q + POOL, q] = 1.0 / POOL
    p_single = np.kron(ph, pw)                                   # (Ho*Wo, Hp*Wp)
    p_mat = np.kron(np.eye(N, dtype=np.float32), p_single)       # (N*Ho*Wo, N*Hp*Wp)

    b_col = b.astype(jnp.float32).reshape(Cout, 1)
    g_col = gamma.astype(jnp.float32).reshape(Cout, 1)
    beta_col = beta.astype(jnp.float32).reshape(Cout, 1)

    out2d = pl.pallas_call(
        _model_kernel,
        out_shape=jax.ShapeDtypeStruct((Cout, N * Hp * Wp), jnp.float32),
        in_specs=[
            pl.BlockSpec(memory_space=pltpu.MemorySpace.VMEM),   # patches
            pl.BlockSpec(memory_space=pltpu.MemorySpace.VMEM),   # conv weight
            pl.BlockSpec(memory_space=pltpu.MemorySpace.VMEM),   # conv bias (col)
            pl.BlockSpec(memory_space=pltpu.MemorySpace.VMEM),   # bn gamma (col)
            pl.BlockSpec(memory_space=pltpu.MemorySpace.VMEM),   # bn beta (col)
            pl.BlockSpec(memory_space=pltpu.MemorySpace.VMEM),   # pooling matrix
        ],
        out_specs=pl.BlockSpec(memory_space=pltpu.MemorySpace.VMEM),
    )(patches, w_mat, b_col, g_col, beta_col, jnp.asarray(p_mat))

    # Slab (Cout, N*Hp*Wp) -> NCHW (wrapper-side layout plumbing).
    return out2d.reshape(Cout, N, Hp, Wp).transpose(1, 0, 2, 3)


def _reference_forward(x, w, b, gamma, beta):
    """Pure-JAX reference of the PyTorch module forward."""
    conv = lax.conv_general_dilated(
        x, w, window_strides=(1, 1), padding="VALID",
        dimension_numbers=("NCHW", "OIHW", "NCHW")) + b[None, :, None, None]
    pooled = lax.reduce_window(conv, 0.0, lax.add,
                               (1, 1, POOL, POOL), (1, 1, POOL, POOL),
                               "VALID") / float(POOL * POOL)
    mu = pooled.mean(axis=(0, 2, 3), keepdims=True)
    var = ((pooled - mu) ** 2).mean(axis=(0, 2, 3), keepdims=True)
    return ((pooled - mu) / jnp.sqrt(var + EPS)
            * gamma[None, :, None, None] + beta[None, :, None, None])


if __name__ == "__main__":
    # Small shapes consistent with the module (7 channels fixed by Conv2d(7,7,3)).
    N, C, H, W = 2, 7, 16, 16

    key = jax.random.PRNGKey(0)
    kx, kw, kb = jax.random.split(key, 3)
    x = jax.random.normal(kx, (N, C, H, W), dtype=jnp.float32)
    conv_w = jax.random.normal(kw, (7, 7, KH, KW), dtype=jnp.float32) * 0.1
    conv_b = jax.random.normal(kb, (7,), dtype=jnp.float32) * 0.1
    bn_gamma = jnp.ones((7,), jnp.float32)   # default BatchNorm2d affine init
    bn_beta = jnp.zeros((7,), jnp.float32)

    out = model_forward(x, conv_w, conv_b, bn_gamma, bn_beta)
    out = jax.block_until_ready(out)

    ref = jax.block_until_ready(
        _reference_forward(x, conv_w, conv_b, bn_gamma, bn_beta))

    assert out.shape == ref.shape, (out.shape, ref.shape)
    np.testing.assert_allclose(np.asarray(out), np.asarray(ref),
                               rtol=2e-3, atol=2e-3)
    print("KERNEL_OK")
</pallas_src>

<mosaic_0001>
module attributes {stable_mosaic.version = 11 : i64} {
  func.func @_model_kernel(%arg0: memref<63x392xf32, #tpu.memory_space<vmem>>, %arg1: memref<7x63xf32, #tpu.memory_space<vmem>>, %arg2: memref<7x1xf32, #tpu.memory_space<vmem>>, %arg3: memref<7x1xf32, #tpu.memory_space<vmem>>, %arg4: memref<7x1xf32, #tpu.memory_space<vmem>>, %arg5: memref<392x32xf32, #tpu.memory_space<vmem>>, %arg6: memref<7x32xf32, #tpu.memory_space<vmem>>) attributes {dimension_semantics = [], scalar_prefetch = 0 : i64, scratch_operands = 0 : i64, tpu.core_type = #tpu.core_type<tc>} {
    %c0 = arith.constant 0 : index
    %c0_0 = arith.constant 0 : index
    %0 = vector.load %arg1[%c0, %c0_0] : memref<7x63xf32, #tpu.memory_space<vmem>>, vector<7x63xf32>
    %c0_1 = arith.constant 0 : index
    %c0_2 = arith.constant 0 : index
    %1 = vector.load %arg0[%c0_1, %c0_2] : memref<63x392xf32, #tpu.memory_space<vmem>>, vector<63x392xf32>
    %cst = arith.constant dense<0.000000e+00> : vector<7x392xf32>
    %2 = tpu.matmul %0, %1, %cst {dimension_numbers = #tpu.dot_dimension_numbers<[1], [0], [0], [1], [0, 0, 1, 1], [], []>} : vector<7x63xf32>, vector<63x392xf32>, vector<7x392xf32> -> vector<7x392xf32>
    %c0_3 = arith.constant 0 : index
    %c0_4 = arith.constant 0 : index
    %3 = vector.load %arg2[%c0_3, %c0_4] : memref<7x1xf32, #tpu.memory_space<vmem>>, vector<7x1xf32>
    %4 = vector.broadcast %3 : vector<7x1xf32> to vector<7x392xf32>
    %5 = arith.addf %2, %4 : vector<7x392xf32>
    %c0_5 = arith.constant 0 : index
    %c0_6 = arith.constant 0 : index
    %6 = vector.load %arg5[%c0_5, %c0_6] : memref<392x32xf32, #tpu.memory_space<vmem>>, vector<392x32xf32>
    %cst_7 = arith.constant dense<0.000000e+00> : vector<7x32xf32>
    %7 = tpu.matmul %5, %6, %cst_7 {dimension_numbers = #tpu.dot_dimension_numbers<[1], [0], [0], [1], [0, 0, 1, 1], [], []>} : vector<7x392xf32>, vector<392x32xf32>, vector<7x32xf32> -> vector<7x32xf32>
    %cst_8 = arith.constant dense<0.000000e+00> : vector<7xf32>
    %8 = vector.multi_reduction <add>, %7, %cst_8 [1] : vector<7x32xf32> to vector<7xf32>
    %9 = vector.shape_cast %8 : vector<7xf32> to vector<7x1xf32>
    %cst_9 = arith.constant 3.200000e+01 : f32
    %10 = vector.broadcast %cst_9 : f32 to vector<7x1xf32>
    %11 = arith.divf %9, %10 : vector<7x1xf32>
    %12 = vector.broadcast %11 : vector<7x1xf32> to vector<7x32xf32>
    %13 = arith.subf %7, %12 : vector<7x32xf32>
    %14 = arith.mulf %13, %13 : vector<7x32xf32>
    %cst_10 = arith.constant dense<0.000000e+00> : vector<7xf32>
    %15 = vector.multi_reduction <add>, %14, %cst_10 [1] : vector<7x32xf32> to vector<7xf32>
    %16 = vector.shape_cast %15 : vector<7xf32> to vector<7x1xf32>
    %cst_11 = arith.constant 3.200000e+01 : f32
    %17 = vector.broadcast %cst_11 : f32 to vector<7x1xf32>
    %18 = arith.divf %16, %17 : vector<7x1xf32>
    %cst_12 = arith.constant 9.99999974E-6 : f32
    %19 = vector.broadcast %cst_12 : f32 to vector<7x1xf32>
    %20 = arith.addf %18, %19 : vector<7x1xf32>
    %21 = math.rsqrt %20 : vector<7x1xf32>
    %22 = vector.broadcast %21 : vector<7x1xf32> to vector<7x32xf32>
    %23 = arith.mulf %13, %22 : vector<7x32xf32>
    %c0_13 = arith.constant 0 : index
    %c0_14 = arith.constant 0 : index
    %24 = vector.load %arg3[%c0_13, %c0_14] : memref<7x1xf32, #tpu.memory_space<vmem>>, vector<7x1xf32>
    %25 = vector.broadcast %24 : vector<7x1xf32> to vector<7x32xf32>
    %26 = arith.mulf %23, %25 : vector<7x32xf32>
    %c0_15 = arith.constant 0 : index
    %c0_16 = arith.constant 0 : index
    %27 = vector.load %arg4[%c0_15, %c0_16] : memref<7x1xf32, #tpu.memory_space<vmem>>, vector<7x1xf32>
    %28 = vector.broadcast %27 : vector<7x1xf32> to vector<7x32xf32>
    %29 = arith.addf %26, %28 : vector<7x32xf32>
    %c0_17 = arith.constant 0 : index
    %c0_18 = arith.constant 0 : index
    %30 = vector.load %arg6[%c0_17, %c0_18] : memref<7x32xf32, #tpu.memory_space<vmem>>, vector<7x32xf32>
    tpu.vector_store %arg6[%c0_17, %c0_18], %29 {strides = array<i32>} : memref<7x32xf32, #tpu.memory_space<vmem>>, vector<7x32xf32>,
    return
  }
}

</mosaic_0001>

<bundles_post_ra>
// kernel: tpu_custom_call.1
= control target key start
LH: loop header
LB: loop body
LE: loop exit
PB: predicated region body
PF: predicated region fallthrough
CT: control target
= control target key end

     0   :  { %v626_v7 = vmov 0.0   ;;  %v627_v13 = vmov 0   ;;  %vm67_vm0 = vcmask 1046528   ;;  %vm628_vm1 = vmmov 1   ;;  %s960_s0 = inlined_call_operand.vmem [shape: f32[63,392], index: 0, kind: input, shape index: {}]   ;;  %s961_s1 = inlined_call_operand.vmem [shape: f32[7,63], index: 1, kind: input, shape index: {}]   ;;  %s962_s2 = inlined_call_operand.vmem [shape: f32[7,1], index: 2, kind: input, shape index: {}]   ;;  %s963_s3 = inlined_call_operand.vmem [shape: f32[7,1], index: 3, kind: input, shape index: {}]   ;;  %s964_s4 = inlined_call_operand.vmem [shape: f32[7,1], index: 4, kind: input, shape index: {}]   ;;  %s965_s5 = inlined_call_operand.vmem [shape: f32[392,32], index: 5, kind: input, shape index: {}]   ;;  %s966_s6 = inlined_call_operand.hbm [shape: f32[7,32], index: 6, kind: output, shape index: {}]  }
   0x1   :  { %v26_v0 = vld [vmem:[%s960_s0 + $0x8] sm:$0xff]  ;;  %v28_v2 = vld [vmem:[%s960_s0 + $0x18] sm:$0xff]  ;;  %v25_v5 = vld [vmem:[%s960_s0] sm:$0xff]  ;;  %144 = vmatprep.mubr.f32.mxu0 %v626_v7  ;;  %215 = vmatprep.mubr.f32.mxu1 %v626_v7  ;;  %vm63_vm3 = vcmask 515072  }
   0x2   :  { %v30_v1 = vld [vmem:[%s960_s0 + $0x28] sm:$0xff]  ;;  %v32_v4 = vld [vmem:[%s960_s0 + $0x38] sm:$0xff]  ;;  %v29_v6 = vld [vmem:[%s960_s0 + $0x20] sm:$0xff]  ;;  %598 = vset.pattern.permute.xlu0 %v627_v13  ;;  %599 = vset.pattern.permute.xlu1 %v627_v13 }
   0x3   :  { %v501_v3 = vpack.c.bf16 %v30_v1, %v26_v0  ;;  %v519_v8 = vpack.c.bf16 %v32_v4, %v28_v2  ;;  %v503_v9 = vpack.c.bf16 %v29_v6, %v25_v5  ;;  %v27_v10 = vld [vmem:[%s960_s0 + $0x10] sm:$0xff]  ;;  %v34_v12 = vld [vmem:[%s960_s0 + $0x48] sm:$0xff]  ;;  %v36_v16 = vld [vmem:[%s960_s0 + $0x58] sm:$0xff]  ;;  %v629_v4 = vmov 0.0|0.0  }
   0x4   :  { %v31_v11 = vld [vmem:[%s960_s0 + $0x30] sm:$0xff]  ;;  %v38_v15 = vld [vmem:[%s960_s0 + $0x68] sm:$0xff]  ;;  %v40_v17 = vld [vmem:[%s960_s0 + $0x78] sm:$0xff] }
   0x5   :  { %502 = vmatprep.subr.bf16.mxu0 %v501_v3  ;;  %v521_v14 = vpack.c.bf16 %v31_v11, %v27_v10  ;;  %520 = vmatprep.subr.bf16.mxu1 %v519_v8  ;;  %v505_v18 = vpack.c.bf16 %v38_v15, %v34_v12  ;;  %v523_v19 = vpack.c.bf16 %v40_v17, %v36_v16  ;;  %v33_v20 = vld [vmem:[%s960_s0 + $0x40] sm:$0xff]  ;;  %v35_v22 = vld [vmem:[%s960_s0 + $0x50] sm:$0xff]  ;;  %v42_v25 = vld [vmem:[%s960_s0 + $0x88] sm:$0xff] }
   0x6   :  { %504 = vmatpush1.bf16.msra.mxu0 %v503_v9  ;;  %v37_v21 = vld [vmem:[%s960_s0 + $0x60] sm:$0xff]  ;;  %v39_v24 = vld [vmem:[%s960_s0 + $0x70] sm:$0xff]  ;;  %v46_v26 = vld [vmem:[%s960_s0 + $0xa8] sm:$0xff] }
   0x7   :  { %522 = vmatpush1.bf16.msra.mxu1 %v521_v14  ;;  %v507_v23 = vpack.c.bf16 %v37_v21, %v33_v20  ;;  %506 = vmatprep.subr.bf16.mxu0 %v505_v18  ;;  %v525_v27 = vpack.c.bf16 %v39_v24, %v35_v22  ;;  %v509_v28 = vpack.c.bf16 %v46_v26, %v42_v25  ;;  %v44_v29 = vld [vmem:[%s960_s0 + $0x98] sm:$0xff]  ;;  %v41_v31 = vld [vmem:[%s960_s0 + $0x80] sm:$0xff]  ;;  %v43_v34 = vld [vmem:[%s960_s0 + $0x90] sm:$0xff] }
   0x8   :  { %524 = vmatprep.subr.bf16.mxu1 %v523_v19  ;;  %v48_v30 = vld [vmem:[%s960_s0 + $0xb8] sm:$0xff]  ;;  %v45_v33 = vld [vmem:[%s960_s0 + $0xa0] sm:$0xff]  ;;  %v47_v35 = vld [vmem:[%s960_s0 + $0xb0] sm:$0xff] }
   0x9   :  { %v527_v32 = vpack.c.bf16 %v48_v30, %v44_v29  ;;  %v511_v36 = vpack.c.bf16 %v45_v33, %v41_v31  ;;  %v50_v37 = vld [vmem:[%s960_s0 + $0xc8] sm:$0xff]  ;;  %vm747_vm2 = vmpackc.low %vm67_vm0, %vm628_vm1  ;;  %v529_v40 = vpack.c.bf16 %v47_v35, %v43_v34  ;;  %v52_v42 = vld [vmem:[%s960_s0 + $0xd8] sm:$0xff] }
   0xa   :  { %508 = vmatpush1.bf16.msra.mxu0 %v507_v23  ;;  %v54_v38 = vld [vmem:[%s960_s0 + $0xe8] sm:$0x7f]  ;;  %v56_v43 = vld [vmem:[%s960_s0 + $0xf8] sm:$0x7f]  ;;  %v49_v44 = vld [vmem:[%s960_s0 + $0xc0] sm:$0xff] }
   0xb   :  { %526 = vmatpush1.bf16.msra.mxu1 %v525_v27  ;;  %510 = vmatprep.subr.bf16.mxu0 %v509_v28  ;;  %v513_v41 = vpack.c.bf16 %v54_v38, %v50_v37  ;;  %v531_v45 = vpack.c.bf16 %v56_v43, %v52_v42  ;;  %v53_v46 = vld [vmem:[%s960_s0 + $0xe0] sm:$0x7f]  ;;  %v51_v47 = vld [vmem:[%s960_s0 + $0xd0] sm:$0xff]  ;;  %v239_v52 = vld [vmem:[%s965_s5 + $0x88] sm:$0xff] }
   0xc   :  { %528 = vmatprep.subr.bf16.mxu1 %v527_v32  ;;  %v55_v48 = vld [vmem:[%s960_s0 + $0xf0] sm:$0x7f]  ;;  %v57_v49 = vld [vmem:[%s962_s2] sm:$0x7f]  ;;  %v516_v50 = vpack.c.bf16 %v53_v46, %v49_v44  ;;  %v223_v57 = vld [vmem:[%s965_s5 + $0x8] sm:$0xff] }
   0xd   :  { %60 = vperm.xlu0 %598, %v57_v49   ;;  %v238_v51 = vld [vmem:[%s965_s5 + $0x80] sm:$0xff]  ;;  %v534_v53 = vpack.c.bf16 %v55_v48, %v51_v47  ;;  %v255_v58 = vld [vmem:[%s965_s5 + $0x108] sm:$0xff]  ;;  %v240_v59 = vld [vmem:[%s965_s5 + $0x90] sm:$0xff] }
   0xe   :  { %512 = vmatpush1.bf16.msra.mxu0 %v511_v36  ;;  %v254_v54 = vld [vmem:[%s965_s5 + $0x100] sm:$0xff]  ;;  %v537_v55 = vpack.c.bf16 %v239_v52, %v238_v51  ;;  %v241_v60 = vld [vmem:[%s965_s5 + $0x98] sm:$0xff]  ;;  %v256_v0 = vld [vmem:[%s965_s5 + $0x110] sm:$0xff] }
   0xf   :  { %530 = vmatpush1.bf16.msra.mxu1 %v529_v40  ;;  %515 = vmatprep.subr.msk.bf16.mxu0 %vm747_vm2, %v513_v41  ;;  %v222_v56 = vld [vmem:[%s965_s5] sm:$0xff]  ;;  %v570_v63 = vpack.c.bf16 %v255_v58, %v254_v54  ;;  %v541_v1 = vpack.c.bf16 %v241_v60, %v240_v59  ;;  %v224_v2 = vld [vmem:[%s965_s5 + $0x10] sm:$0xff]  ;;  %v225_v3 = vld [vmem:[%s965_s5 + $0x18] sm:$0xff] }
  0x10   :  { %533 = vmatprep.subr.msk.bf16.mxu1 %vm747_vm2, %v531_v45  ;;  %v24_v61 = vld [vmem:[%s961_s1] sm:$0x7f]  ;;  %v539_v62 = vpack.c.bf16 %v223_v57, %v222_v56  ;;  %v257_v5 = vld [vmem:[%s965_s5 + $0x118] sm:$0xff]  ;;  %v243_v8 = vld [vmem:[%s965_s5 + $0xa8] sm:$0xff]  ;;  %v543_v9 = vpack.c.bf16 %v225_v3, %v224_v2 }
  0x11   :  { %v242_v6 = vld [vmem:[%s965_s5 + $0xa0] sm:$0xff]  ;;  %v573_v10 = vpack.c.bf16 %v257_v5, %v256_v0  ;;  %v227_v14 = vld [vmem:[%s965_s5 + $0x28] sm:$0xff]  ;;  %v244_v16 = vld [vmem:[%s965_s5 + $0xb0] sm:$0xff] }
  0x12   :  { %518 = vmatpush1.bf16.msk.msra.mxu0 %vm747_vm2, %v516_v50  ;;  %v258_v11 = vld [vmem:[%s965_s5 + $0x120] sm:$0xff]  ;;  %v545_v12 = vpack.c.bf16 %v243_v8, %v242_v6  ;;  %v259_v15 = vld [vmem:[%s965_s5 + $0x128] sm:$0xff]  ;;  %v245_v17 = vld [vmem:[%s965_s5 + $0xb8] sm:$0xff] }
  0x13   :  { %536 = vmatpush1.bf16.msk.msra.mxu1 %vm747_vm2, %v534_v53  ;;  %538 = vmatprep.subr.bf16.mxu0 %v537_v55  ;;  %v226_v13 = vld [vmem:[%s965_s5 + $0x20] sm:$0xff]  ;;  %v260_v19 = vld [vmem:[%s965_s5 + $0x130] sm:$0xff]  ;;  %v576_v20 = vpack.c.bf16 %v259_v15, %v258_v11  ;;  %v549_v21 = vpack.c.bf16 %v245_v17, %v244_v16  ;;  %v229_v23 = vld [vmem:[%s965_s5 + $0x38] sm:$0xff] }
  0x14   :  { %569 = vmatprep.subr.bf16.mxu1 %v629_v4  ;;  %v547_v18 = vpack.c.bf16 %v227_v14, %v226_v13  ;;  %v228_v22 = vld [vmem:[%s965_s5 + $0x30] sm:$0xff] }
  0x15   :  { %461 = vmatmul.mubr.msk.f32.vlgmr.msra.gmra.mrb[0].mxu0 %vm63_vm3, %v24_v61 }
  0x16   :  { %464 = vmatmul.mubr.msk.f32.vlgmr.msra.gmra.mrb[0].mxu1 %vm63_vm3, %v24_v61  ;;  %540 = vmatpush3.bf16.msra.mxu0 %v539_v62 }
  0x17   :  { %571 = vmatpush1.bf16.msra.mxu1 %v570_v63  ;;  %542 = vmatprep.subr.bf16.mxu0 %v541_v1 }
  0x18   :  { %572 = vmatprep.subr.bf16.mxu1 %v629_v4 }
  0x1a   :  { %544 = vmatpush3.bf16.msra.mxu0 %v543_v9 }
  0x1b   :  { %574 = vmatpush1.bf16.msra.mxu1 %v573_v10  ;;  %546 = vmatprep.subr.bf16.mxu0 %v545_v12 }
  0x1c   :  { %11 = vsyncpa [#allocation3], 0  ;;  %575 = vmatprep.subr.bf16.mxu1 %v629_v4  ;;  %v261_v24 = vld [vmem:[%s965_s5 + $0x138] sm:$0xff]  ;;  %v246_v25 = vld [vmem:[%s965_s5 + $0xc0] sm:$0xff]  ;;  %v551_v27 = vpack.c.bf16 %v229_v23, %v228_v22  ;;  %vm271_vm4 = vcmask 64512   ;;  %vm415_vm5 = vcmask 260096  }
  0x1d   :  { %v247_v26 = vld [vmem:[%s965_s5 + $0xc8] sm:$0xff]  ;;  %v579_v28 = vpack.c.bf16 %v261_v24, %v260_v19  ;;  %v262_v29 = vld [vmem:[%s965_s5 + $0x140] sm:$0xff]  ;;  %v248_v34 = vld [vmem:[%s965_s5 + $0xd0] sm:$0xff]  ;;  %s630_s10 = smov [#allocation2]  }
  0x1e   :  { %548 = vmatpush3.bf16.msra.mxu0 %v547_v18  ;;  %v553_v30 = vpack.c.bf16 %v247_v26, %v246_v25  ;;  %v230_v31 = vld [vmem:[%s965_s5 + $0x40] sm:$0xff]  ;;  %v231_v32 = vld [vmem:[%s965_s5 + $0x48] sm:$0xff]  ;;  %v249_v35 = vld [vmem:[%s965_s5 + $0xd8] sm:$0xff]  ;;  %s451_s11 = sshll.u32 %s630_s10, 4  ;;  %s452_s11 = int_to_ptr.vmem [resolvable:$true] %s451_s11 }
  0x1f   :  { %577 = vmatpush1.bf16.msra.mxu1 %v576_v20  ;;  %550 = vmatprep.subr.bf16.mxu0 %v549_v21  ;;  %v263_v33 = vld [vmem:[%s965_s5 + $0x148] sm:$0xff]  ;;  %v555_v36 = vpack.c.bf16 %v231_v32, %v230_v31  ;;  %v264_v38 = vld [vmem:[%s965_s5 + $0x150] sm:$0xff]  ;;  %v557_v39 = vpack.c.bf16 %v249_v35, %v248_v34  ;;  %v233_v41 = vld [vmem:[%s965_s5 + $0x58] sm:$0xff]  ;;  %s602_s12 = scalar_lea.vmem %s452_s11, 128  ;;  %p607_p1 = scmp.lt.s32.totalorder %s452_s11, %s452_s11 }
  0x20   :  { %578 = vmatprep.subr.bf16.mxu1 %v629_v4  ;;  %v582_v37 = vpack.c.bf16 %v263_v33, %v262_v29  ;;  %v232_v40 = vld [vmem:[%s965_s5 + $0x50] sm:$0xff]  ;;  %v265_v42 = vld [vmem:[%s965_s5 + $0x158] sm:$0xff]  ;;  %v250_v43 = vld [vmem:[%s965_s5 + $0xe0] sm:$0xff]  ;;  %p603_p0 = scmp.ne.s32.totalorder %s452_s11, %s602_s12  ;;  %p608_p2 = scmp.lt.s32.totalorder %s602_s12, %s602_s12 }
  0x21   :  { %v251_v44 = vld [vmem:[%s965_s5 + $0xe8] sm:$0xff]  ;;  %v559_v45 = vpack.c.bf16 %v233_v41, %v232_v40  ;;  %v585_v46 = vpack.c.bf16 %v265_v42, %v264_v38  ;;  %v234_v48 = vld [vmem:[%s965_s5 + $0x60] sm:$0xff]  ;;  %v268_v54 = vld [vmem:[%s965_s5 + $0x170] sm:$0xff] }
  0x22   :  { %552 = vmatpush3.bf16.msra.mxu0 %v551_v27  ;;  %v561_v47 = vpack.c.bf16 %v251_v44, %v250_v43  ;;  %v235_v49 = vld [vmem:[%s965_s5 + $0x68] sm:$0xff]  ;;  %v266_v50 = vld [vmem:[%s965_s5 + $0x160] sm:$0xff]  ;;  %v269_v55 = vld [vmem:[%s965_s5 + $0x178] sm:$0xff]  ;;  %p609_p3 = por %p608_p2, %p607_p1 }
  0x23   :  { %580 = vmatpush1.bf16.msra.mxu1 %v579_v28  ;;  %554 = vmatprep.subr.bf16.mxu0 %v553_v30  ;;  %v267_v51 = vld [vmem:[%s965_s5 + $0x168] sm:$0xff]  ;;  %v563_v52 = vpack.c.bf16 %v235_v49, %v234_v48  ;;  %v591_v56 = vpack.c.bf16 %v269_v55, %v268_v54  ;;  %v252_v57 = vld [vmem:[%s965_s5 + $0xf0] sm:$0xff]  ;;  %v253_v58 = vld [vmem:[%s965_s5 + $0xf8] sm:$0xff] }
  0x24   :  { %581 = vmatprep.subr.bf16.mxu1 %v629_v4  ;;  %v588_v53 = vpack.c.bf16 %v267_v51, %v266_v50  ;;  %v565_v59 = vpack.c.bf16 %v253_v58, %v252_v57  ;;  %v236_v60 = vld [vmem:[%s965_s5 + $0x70] sm:$0xff]  ;;  %v237_v61 = vld [vmem:[%s965_s5 + $0x78] sm:$0xff]  ;;  %v270_v63 = vld [vmem:[%s965_s5 + $0x180] sm:$0xff]  ;;  %p610_p4 = pnand %p609_p3, %p603_p0 }
  0x25   :  { %v567_v62 = vpack.c.bf16 %v237_v61, %v236_v60  ;;  %v437_v22 = vld [vmem:[%s964_s4] sm:$0x7f] }
  0x26   :  { %556 = vmatpush3.bf16.msra.mxu0 %v555_v36 }
  0x27   :  { %583 = vmatpush1.bf16.msra.mxu1 %v582_v37  ;;  %558 = vmatprep.subr.bf16.mxu0 %v557_v39 }
  0x28   :  { %584 = vmatprep.subr.bf16.mxu1 %v629_v4 }
  0x2a   :  { %560 = vmatpush3.bf16.msra.mxu0 %v559_v45 }
  0x2b   :  { %586 = vmatpush1.bf16.msra.mxu1 %v585_v46  ;;  %562 = vmatprep.subr.bf16.mxu0 %v561_v47 }
  0x2c   :  { %587 = vmatprep.subr.bf16.mxu1 %v629_v4 }
  0x2e   :  { %564 = vmatpush3.bf16.msra.mxu0 %v563_v52 }
  0x2f   :  { %589 = vmatpush1.bf16.msra.mxu1 %v588_v53  ;;  %566 = vmatprep.subr.bf16.mxu0 %v565_v59 }
  0x30   :  { %590 = vmatprep.subr.bf16.mxu1 %v629_v4 }
  0x32   :  { %568 = vmatpush3.bf16.msra.mxu0 %v567_v62 }
  0x33   :  { %592 = vmatpush1.bf16.msra.mxu1 %v591_v56 }
  0x34   :  { %377 = vmatprep.subr.mxu1 %v626_v7  ;;  %v430_v7 = vld [vmem:[%s963_s3] sm:$0x7f] }
  0x35   :  { %433 = vperm.xlu1 %599, %v430_v7  }
  0x37   :  { %378 = vmatpush1.msra.mxu1 %v270_v63 }
  0x8c   :  { %v61_v0 = vpop.permute.xlu0 %60 }
  0xb4   :  { %v434_v23 = vpop.permute.xlu1 %433 }
  0xe8   :  { %v146_v1 = vpop.f32.mrb[0].mxu0 }
  0xe9   :  { %v217_v2 = vpop.f32.mrb[0].mxu1  ;;  %v148_v3 = vpop.f32.mrb[1].mxu0  ;;  %v147_v8 = vadd.f32 %v146_v1, %v61_v0 }
  0xea   :  { %v218_v4 = vadd.f32 %v217_v2, %v61_v0  ;;  %v149_v5 = vadd.f32 %v148_v3, %v61_v0  ;;  %v219_v6 = vpop.f32.mrb[1].mxu1 }
  0xeb   :  { %v220_v9 = vadd.f32 %v219_v6, %v61_v0 }
  0xec   :  { %339 = vmatprep.mubr.f32.mxu0 %v149_v5 }
  0xed   :  { %465 = vmatprep.mubr.msk.f32.mxu1 %vm271_vm4, %v220_v9  ;;  %340 = vmatmul.mubr.f32.vlgmr.msra.gmra.mrb[2].mxu0 %v147_v8 }
  0xee   :  { %410 = vmatmul.mubr.f32.vlgmr.msra.gmra.mrb[2].mxu1 %v218_v4 }
 0x1c0   :  { %v498_v10 = vpop.f32.mrb[2].mxu0 }
 0x1c1   :  { %v411_v11 = vpop.f32.mrb[2].mxu1  ;;  %v499_v12 = vpop.f32.mrb[3].mxu0 }
 0x1c2   :  { %v500_v13 = vadd.f32 %v499_v12, %v498_v10  ;;  %v413_v14 = vpop.f32.mrb[3].mxu1 }
 0x1c4   :  { %v412_v15 = vadd.f32 %v500_v13, %v411_v11 }
 0x1c6   :  { %v416_v16 = vsel %vm415_vm5, %v412_v15, 0.0 }
 0x1c7   :  { %417 = vadd.xlane.f32.xlu0 %v416_v16 }
 0x254   :  { %v418_v17 = vpop.xlane.xlu0 %417 }
 0x255   :  { %v420_v18 = vmul.f32 0.03125, %v418_v17 }
 0x257   :  { %v421_v19 = vsub.f32 %v412_v15, %v420_v18 }
 0x259   :  { %v422_v20 = vmul.f32 %v421_v19, %v421_v19 }
 0x25b   :  { %v423_v21 = vsel %vm415_vm5, %v422_v20, 0.0 }
 0x25c   :  { %424 = vadd.xlane.f32.xlu1 %v423_v21 }
 0x26d   :  { %440 = vperm.xlu1 %599, %v437_v22  }
 0x2e9   :  { %v425_v24 = vpop.xlane.xlu1 %424 }
 0x2ea   :  { %v426_v25 = vmul.f32 0.03125, %v425_v24 }
 0x2ec   :  { %v427_v26 = vadd.f32 1e-05, %v426_v25 }
 0x2ed   :  { %v441_v30 = vpop.permute.xlu1 %440 }
 0x2ee   :  { %600 = vrsqrt.f32 %v427_v26 }
 0x2f8   :  { %v601_v27 = vpop.eup %600 }
 0x2f9   :  { %v429_v28 = vmul.f32 %v601_v27, %v421_v19 }
 0x2fb   :  { %v436_v29 = vmul.f32 %v434_v23, %v429_v28 }
 0x2fd   :  { %v443_v31 = vadd.f32 %v441_v30, %v436_v29 }
 0x2ff   :  { %444 = vst.msk [vmem:[#allocation2] sm:$0x7f] %vm415_vm5, %v443_v31 }
 0x300   :  { %613 = shalt.err (!%p610_p4)
}
 0x301   :  { %s614_s13 = scalar_lea.hbm %s966_s6, 128 }
 0x302   :  { %p615_p5 = scmp.ne.s32.totalorder %s966_s6, %s614_s13  ;;  %p618_p6 = scmp.lt.u32.totalorder %s614_s13, %s966_s6 }
 0x304   :  { %p620_p7 = pnand %p618_p6, %p615_p5 }
 0x306   :  { %623 = shalt.err (!%p620_p7)
}
 0x307   :  { %454 = dma.vmem_to_hbm [thread:$0]  %s452_s11, 128, %s966_s6, [#allocation3]  }
 0x308   :  { %624 = dma.done.wait [#allocation3], 128  }
 0x309   :  { %625 = vsyncadd [#allocation3], 4294967168 }
 0x30a   :  { %458 = vsyncpa [#allocation3], 1 }

</bundles_post_ra>
